<compile_context>
chip_gen: v7x
topology: tpu7x:2x2x1
jax: 0.10.0
libtpu: 0.0.40
codegen_flags: <defaults>
</compile_context>

<pallas_src>
import jax
import jax.numpy as jnp
import numpy as np
from jax.experimental import pallas as pl
from jax.experimental.pallas import tpu as pltpu


def _forward_kernel(style_ref, shape_ref, style_out_ref, shape_out_ref):
    # Identity forward: out = params.  Whole arrays live in VMEM, single
    # invocation, no grid.
    style_out_ref[...] = style_ref[...]
    shape_out_ref[...] = shape_ref[...]


def optimization_cloth_forward(style, shape):
    """Pallas equivalent of OptimizationCloth.forward() -> (style, shape)."""
    vmem_spec = pl.BlockSpec(memory_space=pltpu.MemorySpace.VMEM)
    return pl.pallas_call(
        _forward_kernel,
        out_shape=(
            jax.ShapeDtypeStruct(style.shape, style.dtype),
            jax.ShapeDtypeStruct(shape.shape, shape.dtype),
        ),
        in_specs=[vmem_spec, vmem_spec],
        out_specs=(vmem_spec, vmem_spec),
        # Outputs alias the parameter buffers: the custom call emits no new
        # HBM output buffers for this pass-through.
        input_output_aliases={0: 0, 1: 1},
    )(style, shape)


def init_params(key, n_style_params=12, n_shape_params=12, initialize_style=None):
    """Deterministic parameter init mirroring OptimizationCloth.__init__."""
    k_style, k_shape = jax.random.split(key)
    if initialize_style is None:
        style = (jax.random.uniform(k_style, (1, n_style_params),
                                    dtype=jnp.float32) - 0.5) / 10.0
    else:
        style = jnp.asarray(initialize_style, dtype=jnp.float32)[None, :]
    shape = (jax.random.uniform(k_shape, (1, n_shape_params),
                                dtype=jnp.float32) - 0.5) / 10.0
    return style, shape


if __name__ == "__main__":
    key = jax.random.PRNGKey(0)
    n_style_params = 12
    n_shape_params = 12

    style_param, shape_param = init_params(key, n_style_params, n_shape_params)

    # Host-side copies for the correctness check (outputs alias the inputs
    # inside the custom call).
    style_expected = np.asarray(style_param)
    shape_expected = np.asarray(shape_param)

    style_out, shape_out = optimization_cloth_forward(style_param, shape_param)
    jax.block_until_ready((style_out, shape_out))

    # Correctness: forward is identity on the parameters.
    assert style_out.shape == (1, n_style_params)
    assert shape_out.shape == (1, n_shape_params)
    assert style_out.dtype == jnp.float32 and shape_out.dtype == jnp.float32
    np.testing.assert_allclose(np.asarray(style_out), style_expected)
    np.testing.assert_allclose(np.asarray(shape_out), shape_expected)

    print("KERNEL_OK")
</pallas_src>

<mosaic_0001>
module attributes {stable_mosaic.version = 11 : i64} {
  func.func @_forward_kernel(%arg0: memref<1x12xf32, #tpu.memory_space<vmem>>, %arg1: memref<1x12xf32, #tpu.memory_space<vmem>>, %arg2: memref<1x12xf32, #tpu.memory_space<vmem>>, %arg3: memref<1x12xf32, #tpu.memory_space<vmem>>) attributes {dimension_semantics = [], scalar_prefetch = 0 : i64, scratch_operands = 0 : i64, tpu.core_type = #tpu.core_type<tc>} {
    %c0 = arith.constant 0 : index
    %c0_0 = arith.constant 0 : index
    %0 = vector.load %arg0[%c0, %c0_0] : memref<1x12xf32, #tpu.memory_space<vmem>>, vector<1x12xf32>
    %c0_1 = arith.constant 0 : index
    %c0_2 = arith.constant 0 : index
    %1 = vector.load %arg2[%c0_1, %c0_2] : memref<1x12xf32, #tpu.memory_space<vmem>>, vector<1x12xf32>
    tpu.vector_store %arg2[%c0_1, %c0_2], %0 {strides = array<i32>} : memref<1x12xf32, #tpu.memory_space<vmem>>, vector<1x12xf32>,
    %c0_3 = arith.constant 0 : index
    %c0_4 = arith.constant 0 : index
    %2 = vector.load %arg1[%c0_3, %c0_4] : memref<1x12xf32, #tpu.memory_space<vmem>>, vector<1x12xf32>
    %c0_5 = arith.constant 0 : index
    %c0_6 = arith.constant 0 : index
    %3 = vector.load %arg3[%c0_5, %c0_6] : memref<1x12xf32, #tpu.memory_space<vmem>>, vector<1x12xf32>
    tpu.vector_store %arg3[%c0_5, %c0_6], %2 {strides = array<i32>} : memref<1x12xf32, #tpu.memory_space<vmem>>, vector<1x12xf32>,
    return
  }
}

</mosaic_0001>

<bundles_post_ra>
// kernel: tpu_custom_call.1
= control target key start
LH: loop header
LB: loop body
LE: loop exit
PB: predicated region body
PF: predicated region fallthrough
CT: control target
= control target key end

     0   :  { %9 = vsyncpa [#allocation3], 0  ;;  %s254_s0 = inlined_call_operand.hbm [shape: f32[1,12], index: 0, kind: input, shape index: {}, may-alias: {0,2}]   ;;  %s255_s1 = inlined_call_operand.hbm [shape: f32[1,12], index: 1, kind: input, shape index: {}, may-alias: {1,3}]   ;;  %s256_s2 = inlined_call_operand.hbm [shape: f32[1,12], index: 2, kind: output, shape index: {0}, may-alias: {0,2}]   ;;  %s257_s3 = inlined_call_operand.hbm [shape: f32[1,12], index: 3, kind: output, shape index: {1}, may-alias: {1,3}]  }
   0x1   :  { %10 = vsyncpa [#allocation6], 0 }
   0x2   :  { %11 = vsyncpa [#allocation4], 0 }
   0x3   :  { %12 = vsyncpa [#allocation9], 0  ;;  %s174_s12 = smov [#allocation2]   ;;  %s175_s14 = smov [#allocation5]  }
   0x4   :  { %s19_s13 = sshll.u32 %s174_s12, 4  ;;  %s29_s15 = sshll.u32 %s175_s14, 4  ;;  %s20_s13 = int_to_ptr.vmem [resolvable:$true] %s19_s13  ;;  %s30_s15 = int_to_ptr.vmem [resolvable:$true] %s29_s15 }
   0x5   :  { %s78_s18 = scalar_lea.hbm %s254_s0, 16 }
   0x6   :  { %p79_p0 = scmp.ne.s32.totalorder %s254_s0, %s78_s18  ;;  %p82_p1 = scmp.lt.u32.totalorder %s78_s18, %s254_s0 }
   0x8   :  { %p84_p2 = pnand %p82_p1, %p79_p0 }
   0xa   :  { %87 = shalt.err (!%p84_p2)
}
   0xb   :  { %s88_s23 = scalar_lea.vmem %s20_s13, 16  ;;  %s92_s24 = scalar_lea.vmem %s20_s13, 32 }
   0xc   :  { %p89_p3 = scmp.ne.s32.totalorder %s20_s13, %s88_s23  ;;  %p93_p4 = scmp.lt.s32.totalorder %s20_s13, %s20_s13 }
   0xd   :  { %p94_p5 = scmp.lt.s32.totalorder %s92_s24, %s88_s23 }
   0xf   :  { %p95_p6 = por %p94_p5, %p93_p4 }
  0x11   :  { %p96_p7 = pnand %p95_p6, %p89_p3 }
  0x13   :  { %99 = shalt.err (!%p96_p7)
}
  0x14   :  { %22 = dma.hbm_to_vmem [thread:$0]  %s254_s0, 16, %s20_s13, [#allocation3]  }
  0x15   :  { %s100_s29 = scalar_lea.hbm %s255_s1, 16 }
  0x16   :  { %p101_p8 = scmp.ne.s32.totalorder %s255_s1, %s100_s29  ;;  %p104_p9 = scmp.lt.u32.totalorder %s100_s29, %s255_s1 }
  0x18   :  { %p106_p10 = pnand %p104_p9, %p101_p8 }
  0x1a   :  { %109 = shalt.err (!%p106_p10)
}
  0x1b   :  { %s110_s7 = scalar_lea.vmem %s30_s15, 16  ;;  %s114_s8 = scalar_lea.vmem %s30_s15, 32 }
  0x1c   :  { %p111_p11 = scmp.ne.s32.totalorder %s30_s15, %s110_s7  ;;  %p115_p12 = scmp.lt.s32.totalorder %s30_s15, %s30_s15 }
  0x1d   :  { %p116_p13 = scmp.lt.s32.totalorder %s114_s8, %s110_s7 }
  0x1f   :  { %p117_p0 = por %p116_p13, %p115_p12 }
  0x21   :  { %p118_p1 = pnand %p117_p0, %p111_p11 }
  0x23   :  { %121 = shalt.err (!%p118_p1)
}
  0x24   :  { %32 = dma.hbm_to_vmem [thread:$0]  %s255_s1, 16, %s30_s15, [#allocation6]  }
  0x25   :  { %166 = dma.done.wait [#allocation3], 16  }
  0x26   :  { %167 = vsyncadd [#allocation3], 4294967280 }
  0x27   :  { %168 = dma.done.wait [#allocation6], 16  }
  0x28   :  { %169 = vsyncadd [#allocation6], 4294967280  ;;  %s176_s10 = smov [#allocation7]   ;;  %s177_s12 = smov [#allocation8]   ;;  %vm40_vm0 = vcmask 90112  }
  0x29   :  { %s50_s11 = sshll.u32 %s176_s10, 4  ;;  %s60_s13 = sshll.u32 %s177_s12, 4  ;;  %v39_v0 = vld [vmem:[#allocation2] sm:$0x1]  ;;  %v42_v1 = vld [vmem:[#allocation5] sm:$0x1]  ;;  %s51_s11 = int_to_ptr.vmem [resolvable:$true] %s50_s11  ;;  %s222_s13 = int_to_ptr.vmem [resolvable:$true] %s60_s13 }
  0x2a   :  { %41 = vst.msk [vmem:[#allocation7] sm:$0x1] %vm40_vm0, %v39_v0  ;;  %43 = vst.msk [vmem:[#allocation8] sm:$0x1] %vm40_vm0, %v42_v1  ;;  %s122_s14 = scalar_lea.vmem %s51_s11, 16  ;;  %s126_s16 = scalar_lea.vmem %s51_s11, 32 }
  0x2b   :  { %p123_p2 = scmp.ne.s32.totalorder %s51_s11, %s122_s14  ;;  %p127_p3 = scmp.lt.s32.totalorder %s51_s11, %s51_s11 }
  0x2c   :  { %p128_p4 = scmp.lt.s32.totalorder %s126_s16, %s122_s14 }
  0x2e   :  { %p129_p5 = por %p128_p4, %p127_p3 }
  0x30   :  { %p130_p6 = pnand %p129_p5, %p123_p2 }
  0x32   :  { %133 = shalt.err (!%p130_p6)
}
  0x33   :  { %s134_s17 = scalar_lea.hbm %s256_s2, 16 }
  0x34   :  { %p135_p7 = scmp.ne.s32.totalorder %s256_s2, %s134_s17  ;;  %p138_p8 = scmp.lt.u32.totalorder %s134_s17, %s256_s2 }
  0x36   :  { %p140_p9 = pnand %p138_p8, %p135_p7 }
  0x38   :  { %143 = shalt.err (!%p140_p9)
}
  0x39   :  { %53 = dma.vmem_to_hbm [thread:$0]  %s51_s11, 16, %s256_s2, [#allocation4]  }
  0x3a   :  { %s144_s24 = scalar_lea.vmem %s222_s13, 16  ;;  %s148_s25 = scalar_lea.vmem %s222_s13, 32 }
  0x3b   :  { %p145_p10 = scmp.ne.s32.totalorder %s222_s13, %s144_s24  ;;  %p149_p11 = scmp.lt.s32.totalorder %s222_s13, %s222_s13 }
  0x3c   :  { %p150_p12 = scmp.lt.s32.totalorder %s148_s25, %s144_s24 }
  0x3e   :  { %p151_p13 = por %p150_p12, %p149_p11 }
  0x40   :  { %p152_p0 = pnand %p151_p13, %p145_p10 }
  0x42   :  { %155 = shalt.err (!%p152_p0)
}
  0x43   :  { %s156_s28 = scalar_lea.hbm %s257_s3, 16 }
  0x44   :  { %p157_p1 = scmp.ne.s32.totalorder %s257_s3, %s156_s28  ;;  %p160_p2 = scmp.lt.u32.totalorder %s156_s28, %s257_s3 }
  0x46   :  { %p162_p3 = pnand %p160_p2, %p157_p1 }
  0x48   :  { %165 = shalt.err (!%p162_p3)
}
  0x49   :  { %63 = dma.vmem_to_hbm [thread:$0]  %s222_s13, 16, %s257_s3, [#allocation9]  }
  0x4a   :  { %170 = dma.done.wait [#allocation4], 16  }
  0x4b   :  { %171 = vsyncadd [#allocation4], 4294967280 }
  0x4c   :  { %172 = dma.done.wait [#allocation9], 16  }
  0x4d   :  { %173 = vsyncadd [#allocation9], 4294967280 }
  0x4e   :  { %70 = vsyncpa [#allocation3], 1 }
  0x4f   :  { %71 = vsyncpa [#allocation6], 1 }
  0x50   :  { %72 = vsyncpa [#allocation4], 1 }
  0x51   :  { %73 = vsyncpa [#allocation9], 1 }

</bundles_post_ra>
